<compile_context>
chip_gen: v5e
topology: v5e:2x2
jax: 0.10.0
libtpu: 0.0.40
codegen_flags: <defaults>
</compile_context>

<pallas_src>
import numpy as np

import jax
import jax.numpy as jnp
from jax.experimental import pallas as pl
from jax.experimental.pallas import tpu as pltpu


def _round_up(v, m):
    return ((v + m - 1) // m) * m


def _sage_kernel(ids_ref, cnt_ref, a_ref, x_nb_ref, x_rt_ref, invdeg_ref,
                 w_nb_ref, w_rt_ref, b_ref, o_ref, acc_ref):
    i = pl.program_id(0)
    k = pl.program_id(1)

    @pl.when(k == 0)
    def _():
        acc_ref[...] = jnp.zeros_like(acc_ref)

    # Accumulate the un-normalized neighbor sum only for nonzero A blocks.
    @pl.when(k < cnt_ref[i])
    def _():
        a = a_ref[...].astype(jnp.bfloat16)     # int8 counts -> bf16 (exact)
        acc_ref[...] += jnp.dot(a, x_nb_ref[...],
                                preferred_element_type=jnp.float32)

    @pl.when(k == pl.num_programs(1) - 1)
    def _():
        # Mean aggregation: per-row 1/deg scaling in f32 (VPU, once per tile).
        agg = acc_ref[...] * invdeg_ref[...]                    # (TM, F_in_pad)
        # Two half-depth MXU matmuls (avoids a (TM, 2*F) f32 concat temp).
        out = jnp.dot(agg.astype(jnp.bfloat16), w_nb_ref[...],
                      preferred_element_type=jnp.float32)
        out = out + jnp.dot(x_rt_ref[...], w_rt_ref[...],
                            preferred_element_type=jnp.float32)
        o_ref[...] = (out + b_ref[...]).astype(o_ref.dtype)


def graphsage_layer(x, edge_index, w_l, w_r, bias):
    """
    x:          (N, F_in)    float32 node features
    edge_index: (2, E)       int32, row 0 = src, row 1 = dst
    w_l:        (F_out, F_in)  neighbor-aggregation weight (PyTorch layout)
    w_r:        (F_out, F_in)  root weight (PyTorch layout)
    bias:       (F_out,)
    returns:    (N, F_out)  float32

    Note: must be called with concrete (non-traced) edge_index; the block-sparse
    grid size is data-dependent.
    """
    n, f_in = x.shape
    f_out = w_l.shape[0]

    f_in_pad = _round_up(f_in, 128)
    f_out_pad = _round_up(f_out, 128)

    # ---- tile selection ----------------------------------------------------
    # Row ("parallel") axis always has >= 2 blocks so both of v7x's TensorCores
    # get work; large graphs use big tiles to amortize per-grid-step overhead.
    if n <= 896:
        n_pad = _round_up(max(n, 16), 128)
        tk = n_pad
        tm = n_pad // 2          # multiple of 32 -> valid int8 sublane tiling
    else:
        tm, tk = 512, 1024
        n_pad = _round_up(n, 1024)
    nb_i, nb_k = n_pad // tm, n_pad // tk

    # ---- glue (plain JAX / numpy, outside the kernel) ----------------------
    src_np = np.asarray(jax.device_get(edge_index[0])).astype(np.int64)
    dst_np = np.asarray(jax.device_get(edge_index[1])).astype(np.int64)

    # Parallel-edge multiplicities must stay exact in int8.
    if src_np.size:
        _, mult = np.unique(dst_np * n_pad + src_np, return_counts=True)
        if int(mult.max()) > 127:
            raise ValueError("edge multiplicity > 127 not representable in the "
                             "int8 adjacency")

    # Dense padded adjacency of edge counts, stored int8 in HBM.
    # TODO(synk): for real graphs, build/cache this (or true block-CSR metadata)
    # once per graph and reuse it across layers instead of re-scattering per call.
    adj = (jnp.zeros((n_pad, n_pad), jnp.int32)
           .at[edge_index[1], edge_index[0]].add(1)).astype(jnp.int8)

    # Degree via edge segment-sum (no dense N^2 row-reduction pass).
    deg = jnp.zeros((n_pad,), jnp.float32).at[edge_index[1]].add(1.0)
    inv_deg = (1.0 / jnp.maximum(deg, 1.0)).reshape(n_pad, 1)

    # Block-sparsity metadata, O(E) on the host: which k-blocks are nonzero for
    # each row block.
    blk = np.zeros((nb_i, nb_k), dtype=bool)
    if src_np.size:
        blk[dst_np // tm, src_np // tk] = True
    counts = blk.sum(axis=1).astype(np.int32)                    # (nb_i,)
    max_c = max(int(counts.max()), 1)
    ids = np.zeros((nb_i, max_c), np.int32)
    for bi in range(nb_i):
        nz = np.flatnonzero(blk[bi]).astype(np.int32)
        if nz.size:
            ids[bi, :nz.size] = nz
            ids[bi, nz.size:] = nz[-1]   # repeat -> padded steps reuse the DMA'd block
    kblk_ids = jnp.asarray(ids.reshape(-1))      # flat 1-D: cheap SMEM layout
    kblk_cnt = jnp.asarray(counts)

    # Features bf16 in HBM (f32 accumulation in-kernel); weights bf16; bias f32.
    x_bf = jnp.zeros((n_pad, f_in_pad), jnp.bfloat16).at[:n, :f_in].set(
        x.astype(jnp.bfloat16))
    w_nb = jnp.zeros((f_in_pad, f_out_pad), jnp.bfloat16).at[:f_in, :f_out].set(
        w_l.T.astype(jnp.bfloat16))
    w_rt = jnp.zeros((f_in_pad, f_out_pad), jnp.bfloat16).at[:f_in, :f_out].set(
        w_r.T.astype(jnp.bfloat16))
    b_pad = jnp.zeros((1, f_out_pad), jnp.float32).at[0, :f_out].set(bias)

    grid = (nb_i, max_c)
    nnz_blocks = int(blk.sum())

    flops = (2.0 * nnz_blocks * tm * tk * f_in_pad
             + 2.0 * n_pad * f_in_pad * f_out_pad * 2)
    bytes_accessed = (nnz_blocks * tm * tk * 1                   # A (int8)
                      + nnz_blocks * tk * f_in_pad * 2           # neighbor X (re-streamed)
                      + n_pad * f_in_pad * 2                     # root X
                      + 2 * f_in_pad * f_out_pad * 2             # weights
                      + n_pad * 4 + f_out_pad * 4                # 1/deg + bias
                      + n_pad * f_out_pad * 4)                   # output

    # index_maps receive the scalar-prefetch refs as trailing positional args.
    a_map   = lambda i, k, ids, cnt: (i, ids[i * max_c + k])
    xnb_map = lambda i, k, ids, cnt: (ids[i * max_c + k], 0)
    row_map = lambda i, k, ids, cnt: (i, 0)
    w_map   = lambda i, k, ids, cnt: (0, 0)

    out_pad = pl.pallas_call(
        _sage_kernel,
        out_shape=jax.ShapeDtypeStruct((n_pad, f_out_pad), jnp.float32),
        grid_spec=pltpu.PrefetchScalarGridSpec(
            num_scalar_prefetch=2,
            grid=grid,
            in_specs=[
                pl.BlockSpec((tm, tk), a_map),                   # A counts (int8)
                pl.BlockSpec((tk, f_in_pad), xnb_map),           # X (neighbors, bf16)
                pl.BlockSpec((tm, f_in_pad), row_map),           # X (roots, bf16)
                pl.BlockSpec((tm, 1), row_map),                  # 1/deg (f32)
                # TODO(synk): for large F, tile W over an f_out grid axis (or
                # single-buffer it) so its double-buffered copy stays in VMEM.
                pl.BlockSpec((f_in_pad, f_out_pad), w_map),      # W_l^T (bf16)
                pl.BlockSpec((f_in_pad, f_out_pad), w_map),      # W_r^T (bf16)
                pl.BlockSpec((1, f_out_pad), w_map),             # bias (f32)
            ],
            out_specs=pl.BlockSpec((tm, f_out_pad), row_map),
            scratch_shapes=[pltpu.VMEM((tm, f_in_pad), jnp.float32)],
        ),
        compiler_params=pltpu.CompilerParams(
            dimension_semantics=("parallel", "arbitrary"),
            vmem_limit_bytes=32 * 1024 * 1024),
        cost_estimate=pl.CostEstimate(
            flops=int(flops), transcendentals=0,
            bytes_accessed=int(bytes_accessed)),
    )(kblk_ids, kblk_cnt, adj, x_bf, x_bf, inv_deg, w_nb, w_rt, b_pad)

    return out_pad[:n, :f_out]


def _reference(x, edge_index, w_l, w_r, bias):
    n = x.shape[0]
    src, dst = edge_index[0], edge_index[1]
    adj = jnp.zeros((n, n), jnp.float32).at[dst, src].add(1.0)
    deg = jnp.maximum(jnp.sum(adj, axis=1, keepdims=True), 1.0)
    agg = (adj / deg) @ x
    return agg @ w_l.T + x @ w_r.T + bias[None, :]


if __name__ == "__main__":
    key = jax.random.PRNGKey(0)
    n_nodes, f_in, f_out, n_edges = 16, 8, 32, 40

    k_x, k_e, k_wl, k_wr, k_b = jax.random.split(key, 5)
    x = jax.random.normal(k_x, (n_nodes, f_in), dtype=jnp.float32)
    edge_index = jax.random.randint(k_e, (2, n_edges), 0, n_nodes,
                                    dtype=jnp.int32)

    # Deterministic param init (shapes from SAGEConv(input_dim, hidden_dim)).
    lim = 1.0 / float(f_in) ** 0.5
    w_l = jax.random.uniform(k_wl, (f_out, f_in), jnp.float32, -lim, lim)
    w_r = jax.random.uniform(k_wr, (f_out, f_in), jnp.float32, -lim, lim)
    bias = jax.random.uniform(k_b, (f_out,), jnp.float32, -lim, lim)

    out = graphsage_layer(x, edge_index, w_l, w_r, bias)
    out = jax.block_until_ready(out)

    ref = _reference(x, edge_index, w_l, w_r, bias)
    assert out.shape == (n_nodes, f_out)
    # bf16 feature/weight streams -> loosened tolerance vs. the f32 reference
    # (deliberate precision/bandwidth tradeoff, see header).
    assert jnp.allclose(out, ref, atol=3e-2, rtol=3e-2)
    print("KERNEL_OK")
</pallas_src>

<mosaic_0001>
module attributes {stable_mosaic.version = 11 : i64} {
  func.func @_sage_kernel(%arg0: i32, %arg1: i32, %arg2: memref<2xi32, #tpu.memory_space<smem>>, %arg3: memref<2xi32, #tpu.memory_space<smem>>, %arg4: memref<64x128xi8, #tpu.memory_space<vmem>>, %arg5: memref<128x128xbf16, #tpu.memory_space<vmem>>, %arg6: memref<64x128xbf16, #tpu.memory_space<vmem>>, %arg7: memref<64x1xf32, #tpu.memory_space<vmem>>, %arg8: memref<128x128xbf16, #tpu.memory_space<vmem>>, %arg9: memref<128x128xbf16, #tpu.memory_space<vmem>>, %arg10: memref<1x128xf32, #tpu.memory_space<vmem>>, %arg11: memref<64x128xf32, #tpu.memory_space<vmem>>, %arg12: memref<64x128xf32, #tpu.memory_space<vmem>>) attributes {dimension_semantics = [#tpu.dimension_semantics<parallel>, #tpu.dimension_semantics<arbitrary>], iteration_bounds = array<i64: 2, 1>, scalar_prefetch = 2 : i64, scratch_operands = 1 : i64, tpu.core_type = #tpu.core_type<tc>, window_params = [{transform_indices = @transform_0, window_bounds = array<i64: 64, 128>}, {transform_indices = @transform_1, window_bounds = array<i64: 128, 128>}, {transform_indices = @transform_2, window_bounds = array<i64: 64, 128>}, {transform_indices = @transform_3, window_bounds = array<i64: 64, 1>}, {pipeline_mode = #tpu.pipeline_mode<synchronous>, transform_indices = @transform_4, window_bounds = array<i64: 128, 128>}, {pipeline_mode = #tpu.pipeline_mode<synchronous>, transform_indices = @transform_5, window_bounds = array<i64: 128, 128>}, {pipeline_mode = #tpu.pipeline_mode<synchronous>, transform_indices = @transform_6, window_bounds = array<i64: 1, 128>}, {transform_indices = @transform_7, window_bounds = array<i64: 64, 128>}]} {
    %c0_i32 = arith.constant 0 : i32
    %0 = arith.cmpi eq, %arg1, %c0_i32 : i32
    %1 = arith.extui %0 : i1 to i32
    %c0_i32_0 = arith.constant 0 : i32
    %2 = arith.cmpi ne, %1, %c0_i32_0 : i32
    scf.if %2 {
      %cst = arith.constant 0.000000e+00 : f32
      %11 = vector.broadcast %cst : f32 to vector<64x128xf32>
      %c0 = arith.constant 0 : index
      %c0_4 = arith.constant 0 : index
      %12 = vector.load %arg12[%c0, %c0_4] : memref<64x128xf32, #tpu.memory_space<vmem>>, vector<64x128xf32>
      tpu.vector_store %arg12[%c0, %c0_4], %11 {strides = array<i32>} : memref<64x128xf32, #tpu.memory_space<vmem>>, vector<64x128xf32>,
    } else {
    }
    %3 = arith.index_cast %arg0 : i32 to index
    %4 = memref.load %arg3[%3] : memref<2xi32, #tpu.memory_space<smem>>
    %5 = arith.cmpi slt, %arg1, %4 : i32
    %6 = arith.extui %5 : i1 to i32
    %c0_i32_1 = arith.constant 0 : i32
    %7 = arith.cmpi ne, %6, %c0_i32_1 : i32
    scf.if %7 {
      %c0 = arith.constant 0 : index
      %c0_4 = arith.constant 0 : index
      %11 = vector.load %arg4[%c0, %c0_4] : memref<64x128xi8, #tpu.memory_space<vmem>>, vector<64x128xi8>
      %12 = arith.sitofp %11 : vector<64x128xi8> to vector<64x128xbf16>
      %c0_5 = arith.constant 0 : index
      %c0_6 = arith.constant 0 : index
      %13 = vector.load %arg12[%c0_5, %c0_6] : memref<64x128xf32, #tpu.memory_space<vmem>>, vector<64x128xf32>
      %c0_7 = arith.constant 0 : index
      %c0_8 = arith.constant 0 : index
      %14 = vector.load %arg5[%c0_7, %c0_8] : memref<128x128xbf16, #tpu.memory_space<vmem>>, vector<128x128xbf16>
      %cst = arith.constant dense<0.000000e+00> : vector<64x128xf32>
      %15 = tpu.matmul %12, %14, %cst {dimension_numbers = #tpu.dot_dimension_numbers<[1], [0], [0], [1], [0, 0, 1, 1], [], []>} : vector<64x128xbf16>, vector<128x128xbf16>, vector<64x128xf32> -> vector<64x128xf32>
      %16 = arith.addf %13, %15 : vector<64x128xf32>
      %c0_9 = arith.constant 0 : index
      %c0_10 = arith.constant 0 : index
      %17 = vector.load %arg12[%c0_9, %c0_10] : memref<64x128xf32, #tpu.memory_space<vmem>>, vector<64x128xf32>
      tpu.vector_store %arg12[%c0_9, %c0_10], %16 {strides = array<i32>} : memref<64x128xf32, #tpu.memory_space<vmem>>, vector<64x128xf32>,
    } else {
    }
    %c0_i32_2 = arith.constant 0 : i32
    %8 = arith.cmpi eq, %arg1, %c0_i32_2 : i32
    %9 = arith.extui %8 : i1 to i32
    %c0_i32_3 = arith.constant 0 : i32
    %10 = arith.cmpi ne, %9, %c0_i32_3 : i32
    scf.if %10 {
      %c0 = arith.constant 0 : index
      %c0_4 = arith.constant 0 : index
      %11 = vector.load %arg12[%c0, %c0_4] : memref<64x128xf32, #tpu.memory_space<vmem>>, vector<64x128xf32>
      %c0_5 = arith.constant 0 : index
      %c0_6 = arith.constant 0 : index
      %12 = vector.load %arg7[%c0_5, %c0_6] : memref<64x1xf32, #tpu.memory_space<vmem>>, vector<64x1xf32>
      %13 = vector.broadcast %12 : vector<64x1xf32> to vector<64x128xf32>
      %14 = arith.mulf %11, %13 : vector<64x128xf32>
      %15 = arith.truncf %14 : vector<64x128xf32> to vector<64x128xbf16>
      %c0_7 = arith.constant 0 : index
      %c0_8 = arith.constant 0 : index
      %16 = vector.load %arg8[%c0_7, %c0_8] : memref<128x128xbf16, #tpu.memory_space<vmem>>, vector<128x128xbf16>
      %cst = arith.constant dense<0.000000e+00> : vector<64x128xf32>
      %17 = tpu.matmul %15, %16, %cst {dimension_numbers = #tpu.dot_dimension_numbers<[1], [0], [0], [1], [0, 0, 1, 1], [], []>} : vector<64x128xbf16>, vector<128x128xbf16>, vector<64x128xf32> -> vector<64x128xf32>
      %c0_9 = arith.constant 0 : index
      %c0_10 = arith.constant 0 : index
      %18 = vector.load %arg6[%c0_9, %c0_10] : memref<64x128xbf16, #tpu.memory_space<vmem>>, vector<64x128xbf16>
      %c0_11 = arith.constant 0 : index
      %c0_12 = arith.constant 0 : index
      %19 = vector.load %arg9[%c0_11, %c0_12] : memref<128x128xbf16, #tpu.memory_space<vmem>>, vector<128x128xbf16>
      %cst_13 = arith.constant dense<0.000000e+00> : vector<64x128xf32>
      %20 = tpu.matmul %18, %19, %cst_13 {dimension_numbers = #tpu.dot_dimension_numbers<[1], [0], [0], [1], [0, 0, 1, 1], [], []>} : vector<64x128xbf16>, vector<128x128xbf16>, vector<64x128xf32> -> vector<64x128xf32>
      %21 = arith.addf %17, %20 : vector<64x128xf32>
      %c0_14 = arith.constant 0 : index
      %c0_15 = arith.constant 0 : index
      %22 = vector.load %arg10[%c0_14, %c0_15] : memref<1x128xf32, #tpu.memory_space<vmem>>, vector<1x128xf32>
      %23 = vector.broadcast %22 : vector<1x128xf32> to vector<64x128xf32>
      %24 = arith.addf %21, %23 : vector<64x128xf32>
      %c0_16 = arith.constant 0 : index
      %c0_17 = arith.constant 0 : index
      %25 = vector.load %arg11[%c0_16, %c0_17] : memref<64x128xf32, #tpu.memory_space<vmem>>, vector<64x128xf32>
      tpu.vector_store %arg11[%c0_16, %c0_17], %24 {strides = array<i32>} : memref<64x128xf32, #tpu.memory_space<vmem>>, vector<64x128xf32>,
    } else {
    }
    return
  }
  func.func @transform_0(%arg0: i32, %arg1: i32, %arg2: memref<2xi32, #tpu.memory_space<smem>>, %arg3: memref<2xi32, #tpu.memory_space<smem>>) -> (i32, i32) {
    %c1_i32 = arith.constant 1 : i32
    %0 = arith.muli %arg0, %c1_i32 : i32
    %1 = arith.addi %0, %arg1 : i32
    %2 = arith.index_cast %1 : i32 to index
    %3 = memref.load %arg2[%2] : memref<2xi32, #tpu.memory_space<smem>>
    %c0_i32 = arith.constant 0 : i32
    return %arg0, %3 : i32, i32
  }
  func.func @transform_1(%arg0: i32, %arg1: i32, %arg2: memref<2xi32, #tpu.memory_space<smem>>, %arg3: memref<2xi32, #tpu.memory_space<smem>>) -> (i32, i32) {
    %c1_i32 = arith.constant 1 : i32
    %0 = arith.muli %arg0, %c1_i32 : i32
    %1 = arith.addi %0, %arg1 : i32
    %2 = arith.index_cast %1 : i32 to index
    %3 = memref.load %arg2[%2] : memref<2xi32, #tpu.memory_space<smem>>
    %c0_i32 = arith.constant 0 : i32
    %c0_i32_0 = arith.constant 0 : i32
    return %3, %c0_i32 : i32, i32
  }
  func.func @transform_2(%arg0: i32, %arg1: i32, %arg2: memref<2xi32, #tpu.memory_space<smem>>, %arg3: memref<2xi32, #tpu.memory_space<smem>>) -> (i32, i32) {
    %c0_i32 = arith.constant 0 : i32
    %c0_i32_0 = arith.constant 0 : i32
    return %arg0, %c0_i32 : i32, i32
  }
  func.func @transform_3(%arg0: i32, %arg1: i32, %arg2: memref<2xi32, #tpu.memory_space<smem>>, %arg3: memref<2xi32, #tpu.memory_space<smem>>) -> (i32, i32) {
    %c0_i32 = arith.constant 0 : i32
    %c0_i32_0 = arith.constant 0 : i32
    return %arg0, %c0_i32 : i32, i32
  }
  func.func @transform_4(%arg0: i32, %arg1: i32, %arg2: memref<2xi32, #tpu.memory_space<smem>>, %arg3: memref<2xi32, #tpu.memory_space<smem>>) -> (i32, i32) {
    %c0_i32 = arith.constant 0 : i32
    %c0_i32_0 = arith.constant 0 : i32
    %c0_i32_1 = arith.constant 0 : i32
    return %c0_i32, %c0_i32_0 : i32, i32
  }
  func.func @transform_5(%arg0: i32, %arg1: i32, %arg2: memref<2xi32, #tpu.memory_space<smem>>, %arg3: memref<2xi32, #tpu.memory_space<smem>>) -> (i32, i32) {
    %c0_i32 = arith.constant 0 : i32
    %c0_i32_0 = arith.constant 0 : i32
    %c0_i32_1 = arith.constant 0 : i32
    return %c0_i32, %c0_i32_0 : i32, i32
  }
  func.func @transform_6(%arg0: i32, %arg1: i32, %arg2: memref<2xi32, #tpu.memory_space<smem>>, %arg3: memref<2xi32, #tpu.memory_space<smem>>) -> (i32, i32) {
    %c0_i32 = arith.constant 0 : i32
    %c0_i32_0 = arith.constant 0 : i32
    %c0_i32_1 = arith.constant 0 : i32
    return %c0_i32, %c0_i32_0 : i32, i32
  }
  func.func @transform_7(%arg0: i32, %arg1: i32, %arg2: memref<2xi32, #tpu.memory_space<smem>>, %arg3: memref<2xi32, #tpu.memory_space<smem>>) -> (i32, i32) {
    %c0_i32 = arith.constant 0 : i32
    %c0_i32_0 = arith.constant 0 : i32
    return %arg0, %c0_i32 : i32, i32
  }
}

</mosaic_0001>

<bundles_post_ra>
// kernel: tpu_custom_call.1
= control target key start
LH: loop header
LB: loop body
LE: loop exit
PB: predicated region body
PF: predicated region fallthrough
CT: control target
= control target key end

     0   :  { %s1632_s15 = smov [#allocation4]   ;;  %s1633_s16 = smov [#allocation5]   ;;  %s1955_s0 = inlined_call_operand.vmem [shape: s32[2], index: 0, kind: input, shape index: {}]   ;;  %s1956_s2 = inlined_call_operand.hbm [shape: s8[128,128], index: 2, kind: input, shape index: {}]   ;;  %s1957_s3 = inlined_call_operand.vmem [shape: bf16[128,128], index: 3, kind: input, shape index: {}]   ;;  %s1958_s4 = inlined_call_operand.vmem [shape: bf16[128,128], index: 4, kind: input, shape index: {}]   ;;  %s1959_s5 = inlined_call_operand.vmem [shape: f32[128,1], index: 5, kind: input, shape index: {}]   ;;  %s1960_s6 = inlined_call_operand.hbm [shape: bf16[128,128], index: 6, kind: input, shape index: {}]   ;;  %s1961_s7 = inlined_call_operand.hbm [shape: bf16[128,128], index: 7, kind: input, shape index: {}]   ;;  %s1962_s8 = inlined_call_operand.vmem [shape: f32[1,128], index: 8, kind: input, shape index: {}]   ;;  %s1963_s9 = inlined_call_operand.hbm [shape: f32[128,128], index: 9, kind: output, shape index: {}]   ;;  %s1964_s1 = inlined_call_operand.hbm [shape: s32[2], index: 1, kind: input, shape index: {}]  }
   0x1   :  { %1974 = sst [smem:[#allocation26_spill]] %s1960_s6  ;;  %s15_s11 = sshll.u32 %s1955_s0, 4  ;;  %s16_s11 = int_to_ptr.vmem [resolvable:$true] %s15_s11 }
   0x2   :  { %1975 = sst [smem:[#allocation27_spill]] %s1961_s7  ;;  %s20_s14 = sshll.u32 %s1964_s1, 4  ;;  %s21_s14 = int_to_ptr.hbm [resolvable:$true] %s20_s14 }
   0x3   :  { %1976 = sst [smem:[#allocation28_spill]] %s1962_s8 }
   0x4   :  { %1977 = sst [smem:[#allocation29_spill]] %s1963_s9 }
   0x5   :  { %18 = dma.vmem_to_smem %s16_s11, 16, %s1632_s15, [#allocation3] }
   0x6   :  { %23 = dma.hbm_to_smem %s21_s14, 16, %s1633_s16, [#allocation3] }
   0x7   :  { %1582 = dma.done.wait [#allocation3], 32 }
   0x8   :  { %1583 = vsyncadd [#allocation3], 4294967264 }
   0x9   :  { %26 = sfence }
   0xa   :  { %27 = vsyncpa [#allocation7], 0 }
   0xb   :  { %29 = vsyncpa [#allocation7 + $0x1], 0 }
   0xc   :  { %30 = vsyncpa [#allocation10], 0 }
   0xd   :  { %31 = vsyncpa [#allocation8], 0 }
   0xe   :  { %33 = vsyncpa [#allocation8 + $0x1], 0  ;;  %s1700_s17 = smov 0   ;;  %s1702_s0 = smov 0  }
   0xf   :  { %s1704_s18 = smov 0   ;;  %s1706_s1 = smov 0  }
  0x10   :  { %s1708_s19 = smov 0   ;;  %s1710_s20 = smov 0  }
  0x11   :  { %s1712_s21 = smov 0   ;;  %s1714_s22 = smov 0  }
  0x12   :  { %s1716_s23 = smov 0  }
  0x13 LB: > { %1978 = sst [smem:[#allocation19_spill]] %s1598_s17  ;;  %s1071_s24 = sadd.s32 4294967295, %s1630_s23   ;;  %s1630_s23 = sphi %s1716_s23, %s39_s23   ;;  %s1626_s22 = sphi %s1714_s22, %s2010_s22   ;;  %s1622_s21 = sphi %s1712_s21, %s2009_s21   ;;  %s1618_s20 = sphi %s1710_s20, %s2008_s20   ;;  %s1614_s19 = sphi %s1708_s19, %s2007_s19   ;;  %s1610_s1 = sphi %s1706_s1, %s2006_s1   ;;  %s1606_s18 = sphi %s1704_s18, %s2002_s18   ;;  %s1602_s0 = sphi %s1702_s0, %s2005_s0   ;;  %s1598_s17 = sphi %s1700_s17, %s2004_s17  }
  0x14   : > { %1979 = sst [smem:[#allocation20_spill]] %s1606_s18  ;;  %s1072_s25 = sadd.s32 4294967294, %s1630_s23  }
  0x15   : > { %1980 = sst [smem:[#allocation21_spill]] %s1630_s23  ;;  %p77_p0 = scmp.ne.s32.totalorder %s1614_s19, %s1610_s1 }
  0x16   : > { %p1746_p1 = scmp.eq.s32.totalorder %s1071_s24, 0  ;;  %p245_p2 = scmp.ne.s32.totalorder %s1606_s18, %s1602_s0 }
  0x17   : > { %p246_p4 = scmp.eq.s32.totalorder %s1071_s24, 1  ;;  %p251_p5 = scmp.ne.s32.totalorder %s1602_s0, %s1598_s17 }
  0x18   : > { %p1754_p3 = por %p1746_p1, %p77_p0  ;;  %p252_p6 = scmp.eq.s32.totalorder %s1072_s25, 1 }
  0x19   : > { %p1760_p7 = por %p246_p4, %p245_p2  ;;  %p1073_p8 = scmp.ge.s32.totalorder %s1630_s23, 1 }
  0x1a   : > { %p1765_p9 = por %p252_p6, %p251_p5  ;;  %p259_p10 = scmp.lt.s32.totalorder %s1630_s23, 3 }
  0x1b   : > { %s1983_s28 = scalar_select %p1760_p7, 1, 0 }
  0x1c   : > { %s1985_s29 = scalar_select %p1765_p9, 1, 0 }
  0x1d   : > { %1984 = sst [smem:[#allocation22_spill]] %s1983_s28  ;;  %p1773_p11 = pnand %p1073_p8, %p259_p10 }
  0x1e   : > { %1986 = sst [smem:[#allocation23_spill]] %s1985_s29  ;;  %s1634_s13 = smov [#allocation9]  }
  0x1f   : > { %s1987_s6 = sld [smem:[#allocation26_spill]]  ;;  %p1293_p12 = pneg %p1773_p11 }
  0x20   : > { %s272_s14 = sshll.u32 %s1634_s13, 4  ;;  %s1989_s7 = sld [smem:[#allocation27_spill]]  ;;  %s273_s14 = int_to_ptr.vmem [resolvable:$true] %s272_s14 }
  0x21   : > { %p1294_p13 = pnand %p1293_p12, %p1746_p1  ;;  %s1635_s24 = smov 64  }
  0x22   : > { %s1636_s25 = smov 4   ;;  %s1637_s30 = smov [#allocation11]  }
  0x23   : > { %s286_s10 = sshll.u32 %s1637_s30, 4  ;;  %s51_s13 = sadd.s32 1, %s1626_s22  ;;  %s287_s10 = int_to_ptr.vmem [resolvable:$true] %s286_s10 }
  0x24   : > { %p53_p2 = scmp.ge.s32.totalorder %s51_s13, 2  ;;  %p71_p4 = scmp.ne.s32.totalorder %s1618_s20, %s1614_s19 }
  0x25   : > { %s270_s11 = sshll.u32 %s1987_s6, 4  ;;  %s56_s6 = sld [smem:[#allocation4 + %s1626_s22]]  ;;  %s271_s11 = int_to_ptr.hbm [resolvable:$true] %s270_s11 }
  0x26   : > { %s284_s1 = sshll.u32 %s1989_s7, 4  ;;  %p72_p5 = scmp.eq.s32.totalorder %s1630_s23, 0  ;;  %s285_s1 = int_to_ptr.hbm [resolvable:$true] %s284_s1 }
  0x27   : > { %1296 = dma.hbm_to_vmem [thread:$0]  (!%p1294_p13), %s271_s11, 1024, %s273_s14, [#allocation10], %s1635_s24, %s1635_s24, %s1636_s25  }
  0x28   : > { %1299 = dma.hbm_to_vmem [thread:$0]  (!%p1294_p13), %s285_s1, 1024, %s287_s10, [#allocation10], %s1635_s24, %s1635_s24, %s1636_s25  }
  0x29   : > { %s2012_s13 = smov (%p53_p2, %s51_s13), 0  ;;  %s235_s15 = sadd.s32 1, %s1606_s18 }
  0x2a   : > { %1990 = sst [smem:[#allocation24_spill]] %s2012_s13  ;;  %s59_s14 = ssub.s32 %s1626_s22, %s2012_s13 }
  0x2b   : > { %s58_s11 = sld [smem:[#allocation4 + %s2012_s13]]  ;;  %p1796_p6 = por %p72_p5, %p71_p4 }
  0x2c   : > { %p233_p8 = scmp.eq.s32.totalorder %s59_s14, 0  ;;  %s64_s24 = sadd.s32 1, %s1618_s20 }
  0x2d   : > { %s303_s25 = sand.u32 1, %s1618_s20   ;;  %p1312_p10 = scmp.lt.s32.totalorder %s1630_s23, 2 }
  0x2e   : > { %s1801_s1 = scalar_select %p233_p8, %s1606_s18, %s235_s15  }
  0x2f   : > { %s1283_s30 = scalar_select %p1796_p6, [#allocation4], [#allocation13] }
  0x30   : > { %1992 = sst [smem:[#allocation25_spill]] %s1801_s1  ;;  %s1077_s29 = sshll.u32 %s303_s25, 4 }
  0x31   : > { %s60_s10 = ssub.s32 %s56_s6, %s58_s11  ;;  %p1810_p13 = pnand %p1312_p10, %p1796_p6 }
  0x32   : > { %s61_s7 = sor.u32 %s60_s10, %s59_s14  ;;  %s2014_s30 = smov (!%p1312_p10, %s1283_s30), [#allocation14] }
  0x33   : > { %p62_p12 = scmp.eq.s32.totalorder %s61_s7, 0  ;;  %s1078_s1 = sshll.u32 %s1626_s22, 1 }
  0x34   : > { %s1284_s17 = scalar_select %p1796_p6, %s1626_s22, 0 }
  0x35   : > { %s1818_s28 = scalar_select %p62_p12, %s1618_s20, %s64_s24  }
  0x36   : > { %s2016_s17 = smov (!%p1312_p10, %s1284_s17), 0  ;;  %s307_s18 = scalar_lea.vmem [#allocation6], %s1077_s29 }
  0x37   : > { %s309_s15 = sld [smem:[%s2014_s30 + %s2016_s17]]  ;;  %s318_s6 = sshll.u32 %s307_s18, 4  ;;  %s319_s6 = int_to_ptr.vmem [resolvable:$true] %s318_s6 }
  0x38   : > { %s304_s16 = scalar_lea.sflag [#allocation7], %s303_s25  ;;  %p1492_p4 = pneg %p1810_p13 }
  0x39   : > { %s1495_s29 = scalar_lea.hbm %s1956_s2, 32 }
  0x3d   : > { %s313_s11 = sadd.s32 %s1078_s1, %s309_s15 }
  0x3e   : > { %s1079_s14 = sshll.u32 %s313_s11, 3 }
  0x3f   : > { %s315_s23 = scalar_lea.hbm %s1956_s2, %s1079_s14 }
  0x40   : > { %s316_s9 = sshll.u32 %s315_s23, 4  ;;  %s317_s9 = int_to_ptr.hbm [resolvable:$true] %s316_s9 }
  0x41   : > { %s1488_s8 = sshra.s32 %s317_s9, 4  ;;  %s1489_s8 = int_to_ptr.hbm [resolvable:$true] %s1488_s8 }
  0x42   : > { %s1490_s24 = scalar_lea.hbm %s1489_s8, 16  ;;  %p1496_p8 = scmp.lt.s32.totalorder %s1489_s8, %s1956_s2 }
  0x43   : > { %p1491_p2 = scmp.ne.s32.totalorder %s1489_s8, %s1490_s24  ;;  %p1497_p10 = scmp.lt.s32.totalorder %s1495_s29, %s1490_s24 }
  0x45   : > { %p1493_p5 = pnand %p1492_p4, %p1491_p2  ;;  %p1498_p12 = por %p1497_p10, %p1496_p8 }
  0x47   : > { %p1494_p6 = pneg %p1493_p5 }
  0x49   : > { %p1499_p0 = pnand %p1498_p12, %p1494_p6 }
  0x4b   : > { %1502 = shalt.err (!%p1499_p0)
}
  0x4c   : > { %s1638_s23 = smov 128   ;;  %s1639_s25 = smov 8  }
  0x4d   : > { %1305 = dma.hbm_to_vmem [thread:$0]  (!%p1810_p13), %s317_s9, 256, %s319_s6, %s304_s16, %s1638_s23, %s1638_s23, %s1639_s25  }
  0x4e   : > { %361 = sbr.rel (%p1773_p11) target bundleno = 571 (0x23b), region = 48  ;;  %s363_s15 = sand.u32 (!%p1773_p11), 1, %s1614_s19  }
  0x4f   : > { %s1837_s11 = sshll.u32 (!%p1773_p11), %s363_s15, 4  ;;  %s364_s14 = scalar_lea.sflag (!%p1773_p11), [#allocation7], %s363_s15 }
  0x50   : > { %s367_s8 = scalar_lea.vmem (!%p1773_p11), [#allocation6], %s1837_s11 }
  0x53   : > { %1585 = dma.done.wait (%p1754_p3), %s364_s14, 256  }
  0x54   : > { %1587 = vsyncadd (%p1754_p3), %s364_s14, 4294967040 }
  0x55   : > { %1589 = dma.done.wait (%p1746_p1), [#allocation10], 2048  }
  0x56   : > { %1591 = vsyncadd (%p1746_p1), [#allocation10], 4294965248  ;;  %s423_s9 = sand.u32 1, %s1602_s0   ;;  %s1087_s12 = sshll.u32 %s1622_s21, 3  ;;  %v1640_v0 = vmov 0.0  }
  0x57   : > { %s430_s13 = sld [smem:[#allocation4 + %s1622_s21]]  ;;  %s1084_s6 = sshll.u32 %s423_s9, 6  ;;  %456 = vst [vmem:[#allocation2 + $0x30] sm:$0xff] %v1640_v0 }
  0x58   : > { %s464_s27 = sld [smem:[#allocation5 + %s1622_s21]]  ;;  %457 = vst [vmem:[#allocation2] sm:$0xff] %v1640_v0  ;;  %p440_p3 = scmp.lt.s32.totalorder %s1087_s12, 15 }
  0x59   : > { %458 = vst [vmem:[#allocation2 + $0x18] sm:$0xff] %v1640_v0  ;;  %s1869_s14 = scalar_lea.vmem [#allocation12], %s1084_s6 }
  0x5a   : > { %459 = vst [vmem:[#allocation2 + $0x10] sm:$0xff] %v1640_v0  ;;  %s2018_s12 = smov (!%p440_p3, %s1087_s12), 15 }
  0x5b   : > { %460 = vst [vmem:[#allocation2 + $0x8] sm:$0xff] %v1640_v0  ;;  %s1088_s7 = sshll.u32 %s2018_s12, 2  ;;  %s1090_s17 = sshll.u32 %s2018_s12, 3 }
  0x5c   : > { %461 = vst [vmem:[#allocation2 + $0x20] sm:$0xff] %v1640_v0  ;;  %s1857_s24 = scalar_lea.vmem %s1958_s4, %s1088_s7  ;;  %s1862_s1 = scalar_lea.vmem %s1959_s5, %s1090_s17 }
  0x5d   : > { %s1085_s26 = sshll.u32 %s430_s13, 4  ;;  %462 = vst [vmem:[#allocation2 + $0x28] sm:$0xff] %v1640_v0 }
  0x5e   : > { %p432_p1 = scmp.lt.s32.totalorder %s1085_s26, 15  ;;  %463 = vst [vmem:[#allocation2 + $0x38] sm:$0xff] %v1640_v0  ;;  %p1092_p11 = scmp.le.s32.totalorder %s464_s27, 0 }
  0x60   : > { %s2020_s26 = smov (!%p432_p1, %s1085_s26), 15  ;;  %468 = sbr.rel (%p1092_p11) target bundleno = 278 (0x116), region = 68 }
  0x61   : > { %s1086_s30 = sshll.u32 %s2020_s26, 2 }
  0x62   : > { %s1867_s15 = scalar_lea.vmem %s1957_s3, %s1086_s30 }
  0x65   : > { %v1217_v1 = vld [vmem:[%s1867_s15 + $0x38] sm:$0xff]  ;;  %v1216_v2 = vld [vmem:[%s1867_s15 + $0x30] sm:$0xff]  ;;  %v1215_v3 = vld [vmem:[%s1867_s15 + $0x28] sm:$0xff] }
  0x66   : > { %563 = vmatpush.bf16.msra.mxu0 %v1217_v1  ;;  %1239 = vmatpush.bf16.msra.mxu1 %v1217_v1  ;;  %v1214_v4 = vld [vmem:[%s1867_s15 + $0x20] sm:$0xff]  ;;  %v1213_v5 = vld [vmem:[%s1867_s15 + $0x18] sm:$0xff]  ;;  %v1212_v6 = vld [vmem:[%s1867_s15 + $0x10] sm:$0xff] }
  0x67   : > { %1240 = vmatpush.bf16.msra.mxu2 %v1217_v1  ;;  %1241 = vmatpush.bf16.msra.mxu3 %v1217_v1  ;;  %v469_v7 = vld [vmem:[%s367_s8] sm:$0xff]  ;;  %v470_v8 = vld [vmem:[%s367_s8 + $0x8] sm:$0xff] }
  0x68   : > { %v471_v9 = vunpack.c.0.s8 %v469_v7  ;;  %v472_v10 = vunpack.c.1.s8 %v469_v7  ;;  %v473_v11 = vunpack.c.2.s8 %v469_v7  ;;  %v474_v12 = vunpack.c.3.s8 %v469_v7  ;;  %v1211_v13 = vld [vmem:[%s1867_s15 + $0x8] sm:$0xff]  ;;  %v1210_v22 = vld [vmem:[%s1867_s15] sm:$0xff]  ;;  %v491_v31 = vld [vmem:[#allocation2 + $0x30] sm:$0xff] }
  0x69   : > { %v475_v14 = vunpack.c.0.s8 %v470_v8  ;;  %v476_v15 = vunpack.c.1.s8 %v470_v8  ;;  %v477_v16 = vunpack.c.2.s8 %v470_v8  ;;  %v478_v17 = vunpack.c.3.s8 %v470_v8  ;;  %v493_v32 = vld [vmem:[#allocation2 + $0x18] sm:$0xff]  ;;  %v495_v37 = vld [vmem:[#allocation2 + $0x8] sm:$0xff]  ;;  %v492_v39 = vld [vmem:[#allocation2] sm:$0xff] }
  0x6a   : > { %564 = vmatpush.bf16.msra.mxu0 %v1216_v2  ;;  %1242 = vmatpush.bf16.msra.mxu1 %v1216_v2  ;;  %v479_v18 = vcvt.s32.f32 %v471_v9  ;;  %v480_v19 = vcvt.s32.f32 %v472_v10  ;;  %v481_v20 = vcvt.s32.f32 %v473_v11  ;;  %v482_v21 = vcvt.s32.f32 %v474_v12  ;;  %v497_v38 = vld [vmem:[#allocation2 + $0x28] sm:$0xff]  ;;  %v494_v40 = vld [vmem:[#allocation2 + $0x10] sm:$0xff]  ;;  %v496_v49 = vld [vmem:[#allocation2 + $0x20] sm:$0xff] }
  0x6b   : > { %1243 = vmatpush.bf16.msra.mxu2 %v1216_v2  ;;  %1244 = vmatpush.bf16.msra.mxu3 %v1216_v2  ;;  %v483_v23 = vcvt.s32.f32 %v475_v14  ;;  %v484_v24 = vcvt.s32.f32 %v476_v15  ;;  %v485_v25 = vcvt.s32.f32 %v477_v16  ;;  %v486_v26 = vcvt.s32.f32 %v478_v17  ;;  %v498_v50 = vld [vmem:[#allocation2 + $0x38] sm:$0xff] }
  0x6c   : > { %v487_v27 = vpack.c.bf16 %v480_v19, %v479_v18  ;;  %v488_v28 = vpack.c.bf16 %v482_v21, %v481_v20 }
  0x6d   : > { %v489_v29 = vpack.c.bf16 %v484_v24, %v483_v23  ;;  %v490_v30 = vpack.c.bf16 %v486_v26, %v485_v25 }
  0x6e   : > { %565 = vmatpush.bf16.msra.mxu0 %v1215_v3  ;;  %1245 = vmatpush.bf16.msra.mxu1 %v1215_v3 }
  0x6f   : > { %1246 = vmatpush.bf16.msra.mxu2 %v1215_v3  ;;  %1247 = vmatpush.bf16.msra.mxu3 %v1215_v3 }
  0x72   : > { %566 = vmatpush.bf16.msra.mxu0 %v1214_v4  ;;  %1248 = vmatpush.bf16.msra.mxu1 %v1214_v4 }
  0x73   : > { %1249 = vmatpush.bf16.msra.mxu2 %v1214_v4  ;;  %1250 = vmatpush.bf16.msra.mxu3 %v1214_v4 }
  0x76   : > { %567 = vmatpush.bf16.msra.mxu0 %v1213_v5  ;;  %1251 = vmatpush.bf16.msra.mxu1 %v1213_v5 }
  0x77   : > { %1252 = vmatpush.bf16.msra.mxu2 %v1213_v5  ;;  %1253 = vmatpush.bf16.msra.mxu3 %v1213_v5 }
  0x7a   : > { %568 = vmatpush.bf16.msra.mxu0 %v1212_v6  ;;  %1254 = vmatpush.bf16.msra.mxu1 %v1212_v6 }
  0x7b   : > { %1255 = vmatpush.bf16.msra.mxu2 %v1212_v6  ;;  %1256 = vmatpush.bf16.msra.mxu3 %v1212_v6 }
  0x7e   : > { %569 = vmatpush.bf16.msra.mxu0 %v1211_v13  ;;  %1257 = vmatpush.bf16.msra.mxu1 %v1211_v13 }
  0x7f   : > { %1258 = vmatpush.bf16.msra.mxu2 %v1211_v13  ;;  %1259 = vmatpush.bf16.msra.mxu3 %v1211_v13 }
  0x82   : > { %570 = vmatpush.bf16.msra.mxu0 %v1210_v22  ;;  %1260 = vmatpush.bf16.msra.mxu1 %v1210_v22 }
  0x83   : > { %1261 = vmatpush.bf16.msra.mxu2 %v1210_v22  ;;  %1262 = vmatpush.bf16.msra.mxu3 %v1210_v22 }
  0x85   : > { %571 = vmatmul.bf16.vlgmr.msra.gmra.mxu0 %v487_v27  ;;  %576 = vmatmul.bf16.vlgmr.msra.gmra.mxu1 %v488_v28 }
  0x86   : > { %581 = vmatmul.bf16.vlgmr.msra.gmra.mxu2 %v489_v29  ;;  %586 = vmatmul.bf16.vlgmr.msra.gmra.mxu3 %v490_v30 }
 0x102   : > { %v572_v33 = vpop.f32.mrf.mxu0  ;;  %v577_v34 = vpop.f32.mrf.mxu1 }
 0x103   : > { %v592_v35 = vadd.f32 %v572_v33, %v491_v31  ;;  %v594_v36 = vadd.f32 %v577_v34, %v493_v32 }
 0x105   : > { %600 = vst [vmem:[#allocation2 + $0x30] sm:$0xff] %v592_v35 }
 0x106   : > { %602 = vst [vmem:[#allocation2 + $0x18] sm:$0xff] %v594_v36 }
 0x109   : > { %v582_v41 = vpop.f32.mrf.mxu2  ;;  %v587_v42 = vpop.f32.mrf.mxu3 }
 0x10a   : > { %v596_v43 = vadd.f32 %v582_v41, %v495_v37  ;;  %v598_v44 = vadd.f32 %v587_v42, %v497_v38  ;;  %v574_v45 = vpop.f32.mrf.mxu0  ;;  %v579_v46 = vpop.f32.mrf.mxu1 }
 0x10b   : > { %v593_v47 = vadd.f32 %v574_v45, %v492_v39  ;;  %v595_v48 = vadd.f32 %v579_v46, %v494_v40 }
 0x10c   : > { %604 = vst [vmem:[#allocation2 + $0x8] sm:$0xff] %v596_v43 }
 0x10d   : > { %606 = vst [vmem:[#allocation2 + $0x28] sm:$0xff] %v598_v44 }
 0x10e   : > { %601 = vst [vmem:[#allocation2] sm:$0xff] %v593_v47 }
 0x10f   : > { %603 = vst [vmem:[#allocation2 + $0x10] sm:$0xff] %v595_v48 }
 0x111   : > { %v584_v51 = vpop.f32.mrf.mxu2  ;;  %v589_v52 = vpop.f32.mrf.mxu3 }
 0x112   : > { %v597_v53 = vadd.f32 %v584_v51, %v496_v49  ;;  %v599_v54 = vadd.f32 %v589_v52, %v498_v50 }
 0x114   : > { %605 = vst [vmem:[#allocation2 + $0x20] sm:$0xff] %v597_v53 }
 0x115   : > { %607 = vst [vmem:[#allocation2 + $0x38] sm:$0xff] %v599_v54 }
 0x116 PF: > { %v623_v55 = vld [vmem:[%s1862_s1 + $0x20] sm:$0xff]  ;;  %v1641_v57 = vmov 0   ;;  %v625_v58 = vld [vmem:[%s1862_s1 + $0x30] sm:$0xff]  ;;  %v1237_v59 = vld [vmem:[#allocation11 + $0x38] sm:$0xff]  ;;  %s1994_s12 = sld [smem:[#allocation28_spill]]  ;;  %s1238_s13 = sshll.u32 %s1622_s21, 6 }
 0x117   : > { %v619_v56 = vld [vmem:[%s1862_s1] sm:$0xff]  ;;  %1401 = vset.pattern.permute.xlu1 %v1641_v57  ;;  %1400 = vset.pattern.permute.xlu0 %v1641_v57  ;;  %v1225_v60 = vld [vmem:[#allocation9 + $0x38] sm:$0xff]  ;;  %v1236_v61 = vld [vmem:[#allocation11 + $0x30] sm:$0xff]  ;;  %s1995_s26 = sld [smem:[#allocation29_spill]]  ;;  %s930_s16 = sshll.u32 %s1869_s14, 4  ;;  %s931_s16 = int_to_ptr.vmem [resolvable:$true] %s930_s16 }
 0x118   : > { %649 = vperm.xlu0 %1400, %v623_v55   ;;  %629 = vperm.xlu1 %1401, %v619_v56   ;;  %v1224_v62 = vld [vmem:[#allocation9 + $0x30] sm:$0xff]  ;;  %v624_v63 = vld [vmem:[%s1862_s1 + $0x28] sm:$0xff]  ;;  %v626_v2 = vld [vmem:[%s1862_s1 + $0x38] sm:$0xff]  ;;  %s918_s21 = scalar_lea.sflag [#allocation8], %s423_s9 }
 0x119   : > { %1402 = vset.pattern.permute.xlu2 %v1641_v57  ;;  %1263 = vmatpush.bf16.msra.mxu2 %v1237_v59  ;;  %v620_v0 = vld [vmem:[%s1862_s1 + $0x8] sm:$0xff]  ;;  %v1234_v4 = vld [vmem:[#allocation11 + $0x20] sm:$0xff]  ;;  %v621_v6 = vld [vmem:[%s1862_s1 + $0x10] sm:$0xff] }
 0x11a   : > { %659 = vperm.xlu2 %1402, %v625_v58   ;;  %791 = vmatpush.bf16.msra.mxu0 %v1237_v59  ;;  %v1235_v1 = vld [vmem:[#allocation11 + $0x28] sm:$0xff]  ;;  %v1222_v5 = vld [vmem:[#allocation9 + $0x20] sm:$0xff]  ;;  %v622_v7 = vld [vmem:[%s1862_s1 + $0x18] sm:$0xff] }
 0x11b   : > { %868 = vmatpush.bf16.msra.mxu1 %v1225_v60  ;;  %1271 = vmatpush.bf16.msra.mxu3 %v1225_v60  ;;  %v1223_v3 = vld [vmem:[#allocation9 + $0x28] sm:$0xff]  ;;  %v1233_v8 = vld [vmem:[#allocation11 + $0x18] sm:$0xff]  ;;  %v1232_v10 = vld [vmem:[#allocation11 + $0x10] sm:$0xff] }
 0x11c   : > { %v1221_v9 = vld [vmem:[#allocation9 + $0x18] sm:$0xff]  ;;  %v1231_v11 = vld [vmem:[#allocation11 + $0x8] sm:$0xff]  ;;  %v1230_v12 = vld [vmem:[#allocation11] sm:$0xff] }
 0x11d   : > { %1264 = vmatpush.bf16.msra.mxu2 %v1236_v61  ;;  %v1220_v13 = vld [vmem:[#allocation9 + $0x10] sm:$0xff]  ;;  %v1219_v15 = vld [vmem:[#allocation9 + $0x8] sm:$0xff]  ;;  %v1218_v16 = vld [vmem:[#allocation9] sm:$0xff]  ;;  %s929_s7 = scalar_lea.hbm %s1995_s26, %s1238_s13  ;;  %s1538_s30 = scalar_lea.hbm %s1995_s26, 128 }
 0x11e   : > { %792 = vmatpush.bf16.msra.mxu0 %v1236_v61  ;;  %v1228_v14 = vld [vmem:[%s1857_s24 + $0x10] sm:$0xff]  ;;  %v1226_v17 = vld [vmem:[%s1857_s24] sm:$0xff]  ;;  %v1229_v18 = vld [vmem:[%s1857_s24 + $0x18] sm:$0xff] }
 0x11f   : > { %869 = vmatpush.bf16.msra.mxu1 %v1224_v62  ;;  %1272 = vmatpush.bf16.msra.mxu3 %v1224_v62  ;;  %v1227_v19 = vld [vmem:[%s1857_s24 + $0x8] sm:$0xff]  ;;  %v611_v23 = vld [vmem:[#allocation2 + $0x30] sm:$0xff]  ;;  %v616_v24 = vld [vmem:[#allocation2 + $0x20] sm:$0xff]  ;;  %s932_s24 = sshll.u32 %s929_s7, 4  ;;  %s933_s24 = int_to_ptr.hbm [resolvable:$true] %s932_s24 }
 0x120   : > { %654 = vperm.xlu0 %1400, %v624_v63   ;;  %634 = vperm.xlu1 %1401, %v620_v0   ;;  %v615_v22 = vld [vmem:[#allocation2 + $0x8] sm:$0xff]  ;;  %v612_v25 = vld [vmem:[#allocation2] sm:$0xff]  ;;  %v618_v37 = vld [vmem:[#allocation2 + $0x38] sm:$0xff]  ;;  %s1532_s17 = sshra.s32 %s933_s24, 4  ;;  %s1533_s17 = int_to_ptr.hbm [resolvable:$true] %s1532_s17 }
 0x121   : > { %1265 = vmatpush.bf16.msra.mxu2 %v1235_v1  ;;  %v617_v35 = vld [vmem:[#allocation2 + $0x28] sm:$0xff]  ;;  %v613_v39 = vld [vmem:[#allocation2 + $0x18] sm:$0xff]  ;;  %v614_v41 = vld [vmem:[#allocation2 + $0x10] sm:$0xff]  ;;  %s1534_s18 = scalar_lea.hbm %s1533_s17, 64  ;;  %p1539_p4 = scmp.lt.s32.totalorder %s1533_s17, %s1995_s26 }
 0x122   : > { %664 = vperm.xlu2 %1402, %v626_v2   ;;  %793 = vmatpush.bf16.msra.mxu0 %v1235_v1  ;;  %v1403_v49 = vld [vmem:[%s1994_s12] ss:$0 sm:$0xff]  ;;  %p1535_p0 = scmp.ne.s32.totalorder %s1533_s17, %s1534_s18  ;;  %p1540_p5 = scmp.lt.s32.totalorder %s1538_s30, %s1534_s18 }
 0x123   : > { %870 = vmatpush.bf16.msra.mxu1 %v1223_v3  ;;  %1273 = vmatpush.bf16.msra.mxu3 %v1223_v3 }
 0x124   : > { %p1536_p13 = pnand %p1535_p0, %p1760_p7  ;;  %p1541_p6 = por %p1540_p5, %p1539_p4 }
 0x125   : > { %1266 = vmatpush.bf16.msra.mxu2 %v1234_v4 }
 0x126   : > { %794 = vmatpush.bf16.msra.mxu0 %v1234_v4  ;;  %p1537_p2 = pneg %p1536_p13 }
 0x127   : > { %871 = vmatpush.bf16.msra.mxu1 %v1222_v5  ;;  %1274 = vmatpush.bf16.msra.mxu3 %v1222_v5 }
 0x128   : > { %639 = vperm.xlu0 %1400, %v621_v6   ;;  %644 = vperm.xlu1 %1401, %v622_v7   ;;  %p1542_p8 = pnand %p1541_p6, %p1537_p2 }
 0x129   : > { %1267 = vmatpush.bf16.msra.mxu2 %v1233_v8 }
 0x12a   : > { %795 = vmatpush.bf16.msra.mxu0 %v1233_v8 }
 0x12b   : > { %872 = vmatpush.bf16.msra.mxu1 %v1221_v9  ;;  %1275 = vmatpush.bf16.msra.mxu3 %v1221_v9 }
 0x12d   : > { %1268 = vmatpush.bf16.msra.mxu2 %v1232_v10 }
 0x12e   : > { %796 = vmatpush.bf16.msra.mxu0 %v1232_v10 }
 0x12f   : > { %873 = vmatpush.bf16.msra.mxu1 %v1220_v13  ;;  %1276 = vmatpush.bf16.msra.mxu3 %v1220_v13 }
 0x131   : > { %1269 = vmatpush.bf16.msra.mxu2 %v1231_v11 }
 0x132   : > { %797 = vmatpush.bf16.msra.mxu0 %v1231_v11 }
 0x133   : > { %874 = vmatpush.bf16.msra.mxu1 %v1219_v15  ;;  %1277 = vmatpush.bf16.msra.mxu3 %v1219_v15 }
 0x135   : > { %1270 = vmatpush.bf16.msra.mxu2 %v1230_v12 }
 0x136   : > { %798 = vmatpush.bf16.msra.mxu0 %v1230_v12 }
 0x137   : > { %875 = vmatpush.bf16.msra.mxu1 %v1218_v16  ;;  %1278 = vmatpush.bf16.msra.mxu3 %v1218_v16 }
 0x138   : > { %809 = vmatmul.bf16.vlgmr.msra.gmra.mxu2 %v1228_v14 }
 0x139   : > { %799 = vmatmul.bf16.vlgmr.msra.gmra.mxu0 %v1226_v17 }
 0x148   : > { %814 = vmatmul.bf16.gmra.mxu2 %v1229_v18 }
 0x149   : > { %804 = vmatmul.bf16.gmra.mxu0 %v1227_v19 }
 0x174   : > { %v660_v30 = vpop.permute.xlu2 %659 }
 0x175   : > { %v673_v42 = vmul.f32 %v660_v30, %v617_v35 }
 0x17c   : > { %v665_v36 = vpop.permute.xlu2 %664 }
 0x17d   : > { %v674_v43 = vmul.f32 %v665_v36, %v618_v37 }
 0x17f   : > { %v678_v47 = vpack.c.bf16 %v674_v43, %v673_v42 }
 0x18a   : > { %v650_v20 = vpop.permute.xlu0 %649  ;;  %v630_v21 = vpop.permute.xlu1 %629 }
 0x18b   : > { %v671_v28 = vmul.f32 %v650_v20, %v615_v22  ;;  %v667_v29 = vmul.f32 %v630_v21, %v611_v23 }
 0x192   : > { %v655_v26 = vpop.permute.xlu0 %654  ;;  %v635_v27 = vpop.permute.xlu1 %634 }
 0x193   : > { %v672_v31 = vmul.f32 %v655_v26, %v616_v24  ;;  %v668_v32 = vmul.f32 %v635_v27, %v612_v25 }
 0x195   : > { %v675_v33 = vpack.c.bf16 %v668_v32, %v667_v29  ;;  %v677_v34 = vpack.c.bf16 %v672_v31, %v671_v28 }
 0x197   : > { %876 = vmatmul.bf16.vlgmr.msra.gmra.mxu1 %v675_v33  ;;  %886 = vmatmul.bf16.vlgmr.msra.gmra.mxu3 %v677_v34 }
 0x19a   : > { %v640_v38 = vpop.permute.xlu0 %639  ;;  %v645_v40 = vpop.permute.xlu1 %644 }
 0x19b   : > { %v669_v44 = vmul.f32 %v640_v38, %v613_v39  ;;  %v670_v45 = vmul.f32 %v645_v40, %v614_v41 }
 0x19d   : > { %v676_v46 = vpack.c.bf16 %v670_v45, %v669_v44 }
 0x1a7   : > { %881 = vmatmul.bf16.gmra.mxu1 %v676_v46  ;;  %891 = vmatmul.bf16.gmra.mxu3 %v678_v47 }
 0x1b6   : > { %v800_v48 = vpop.f32.mrf.mxu0 }
 0x1bb   : > { %v810_v50 = vpop.f32.mrf.mxu2 }
 0x1be   : > { %v802_v54 = vpop.f32.mrf.mxu0 }
 0x1c3   : > { %v812_v60 = vpop.f32.mrf.mxu2 }
 0x1c6   : > { %v805_v62 = vpop.f32.mrf.mxu0 }
 0x1cb   : > { %v815_v5 = vpop.f32.mrf.mxu2 }
 0x1ce   : > { %v807_v8 = vpop.f32.mrf.mxu0 }
 0x1d3   : > { %v817_v13 = vpop.f32.mrf.mxu2 }
 0x214   : > { %v877_v51 = vpop.f32.mrf.mxu1 }
 0x215   : > { %v878_v52 = vadd.f32 %v877_v51, %v800_v48 }
 0x217   : > { %v901_v53 = vadd.f32 %v1403_v49, %v878_v52 }
 0x219   : > { %909 = vst [vmem:[%s1869_s14] sm:$0xff] %v901_v53 }
 0x21a   : > { %v887_v55 = vpop.f32.mrf.mxu3 }
 0x21b   : > { %v888_v56 = vadd.f32 %v887_v55, %v810_v50 }
 0x21c   : > { %v879_v57 = vpop.f32.mrf.mxu1 }
 0x21d   : > { %v905_v58 = vadd.f32 %v1403_v49, %v888_v56  ;;  %v880_v59 = vadd.f32 %v879_v57, %v802_v54 }
 0x21f   : > { %913 = vst [vmem:[%s1869_s14 + $0x20] sm:$0xff] %v905_v58  ;;  %v902_v61 = vadd.f32 %v1403_v49, %v880_v59 }
 0x221   : > { %910 = vst [vmem:[%s1869_s14 + $0x8] sm:$0xff] %v902_v61 }
 0x222   : > { %v889_v63 = vpop.f32.mrf.mxu3 }
 0x223   : > { %v890_v0 = vadd.f32 %v889_v63, %v812_v60 }
 0x224   : > { %v882_v1 = vpop.f32.mrf.mxu1 }
 0x225   : > { %v906_v2 = vadd.f32 %v1403_v49, %v890_v0  ;;  %v883_v3 = vadd.f32 %v882_v1, %v805_v62 }
 0x227   : > { %914 = vst [vmem:[%s1869_s14 + $0x28] sm:$0xff] %v906_v2  ;;  %v903_v4 = vadd.f32 %v1403_v49, %v883_v3 }
 0x229   : > { %911 = vst [vmem:[%s1869_s14 + $0x10] sm:$0xff] %v903_v4 }
 0x22a   : > { %v892_v6 = vpop.f32.mrf.mxu3 }
 0x22b   : > { %v893_v7 = vadd.f32 %v892_v6, %v815_v5 }
 0x22c   : > { %v884_v9 = vpop.f32.mrf.mxu1 }
 0x22d   : > { %v907_v10 = vadd.f32 %v1403_v49, %v893_v7  ;;  %v885_v11 = vadd.f32 %v884_v9, %v807_v8 }
 0x22f   : > { %915 = vst [vmem:[%s1869_s14 + $0x30] sm:$0xff] %v907_v10  ;;  %v904_v12 = vadd.f32 %v1403_v49, %v885_v11 }
 0x231   : > { %912 = vst [vmem:[%s1869_s14 + $0x18] sm:$0xff] %v904_v12 }
 0x232   : > { %v894_v14 = vpop.f32.mrf.mxu3 }
 0x233   : > { %v895_v15 = vadd.f32 %v894_v14, %v817_v13 }
 0x235   : > { %v908_v16 = vadd.f32 %v1403_v49, %v895_v15 }
 0x237   : > { %916 = vst [vmem:[%s1869_s14 + $0x38] sm:$0xff] %v908_v16 }
 0x238   : > { %1545 = shalt.err (!%p1542_p8)
}
 0x239   : > { %s1642_s9 = smov 128   ;;  %s1643_s15 = smov 8  }
 0x23a   : > { %1291 = dma.vmem_to_hbm [thread:$0]  (%p1760_p7), %s931_s16, 1024, %s933_s24, %s918_s21, %s1642_s9, %s1642_s9, %s1643_s15  }
 0x23b PF: > { %s1997_s14 = sld [smem:[#allocation19_spill]] }
 0x23c   : > { %s1999_s8 = sld [smem:[#allocation21_spill]] }
 0x241   : > { %s947_s12 = sand.u32 1, %s1997_s14  }
 0x242   : > { %p2000_p10 = scmp.ge.s32.totalorder %s1999_s8, 2  ;;  %s948_s13 = scalar_lea.sflag [#allocation8], %s947_s12 }
 0x244   : > { %p1307_p12 = pnand %p2000_p10, %p1765_p9 }
 0x246   : > { %p1308_p3 = pneg %p1307_p12 }
 0x248   : > { %1593 = dma.done.wait (%p1308_p3), %s948_s13, 1024  }
 0x249   : > { %1595 = vsyncadd (%p1308_p3), %s948_s13, 4294966272  ;;  %s39_s23 = sadd.s32 1, %s1999_s8   ;;  %s2001_s6 = sld [smem:[#allocation20_spill]] }
 0x24a   : > { %p36_p1 = scmp.ge.s32.totalorder %s39_s23, 4   ;;  %s2002_s18 = sld [smem:[#allocation25_spill]] }
 0x24b   : > { %s2003_s27 = sld [smem:[#allocation24_spill]]  ;;  %s2004_s17 = smov %s1602_s0 }
 0x24c   : > { %s2006_s1 = smov %s1614_s19  ;;  %s2007_s19 = smov %s1618_s20 }
 0x24d   : > { %s2008_s20 = smov %s1818_s28  ;;  %s2009_s21 = smov %s1626_s22 }
 0x24e   :  { %38 = sbr.rel (!%p36_p1) target bundleno = 19 (0x13), region = 122 }
 0x24f   : > { %s2005_s0 = smov %s2001_s6 }
 0x251   : > { %s2010_s22 = smov %s2003_s27 }
 0x253   :  { %954 = vsyncpa [#allocation7], 1 }
 0x254   :  { %956 = vsyncpa [#allocation7 + $0x1], 1 }
 0x255   :  { %957 = vsyncpa [#allocation10], 1 }
 0x256   :  { %958 = vsyncpa [#allocation8], 1 }
 0x257   :  { %960 = vsyncpa [#allocation8 + $0x1], 1 }

</bundles_post_ra>
